<compile_context>
chip_gen: v5e
topology: v5e:2x2
jax: 0.10.0
libtpu: 0.0.40
codegen_flags: <defaults>
</compile_context>

<pallas_src>
import jax
import jax.numpy as jnp
from jax.experimental import pallas as pl
from jax.experimental.pallas import tpu as pltpu

_EPS = 1e-12  # F.normalize default eps


def _cosine_kernel(x_ref, w_ref, ix_ref, iw_ref, o_ref):
    k = pl.program_id(2)

    # Contraction over the LAST dim of both operands (no W^T materialization);
    # operands stay in their storage dtype, fp32 accumulation on the MXU.
    partial = jax.lax.dot_general(
        x_ref[...], w_ref[...],
        dimension_numbers=(((1,), (1,)), ((), ())),
        preferred_element_type=jnp.float32,
    )

    # The fp32 output block is the accumulator (index_map ignores k).
    @pl.when(k == 0)
    def _first():
        o_ref[...] = partial

    @pl.when(k > 0)
    def _accum():
        o_ref[...] += partial

    @pl.when(k == pl.num_programs(2) - 1)
    def _finalize():
        # Post-matmul normalization: algebraically identical to normalizing
        # the inputs; inverse norms were precomputed in fp32 by the wrapper.
        o_ref[...] = o_ref[...] * (ix_ref[...] * iw_ref[...])


def _round_up(x, m):
    return (x + m - 1) // m * m


def cosine_classifier(x, weight, *, tm=None, tn=None, tk=None,
                      matmul_dtype=None, vmem_budget_bytes=24 << 20):
    """x: (B, dim), weight: (classes, dim) -> cosine logits (B, classes), fp32."""
    B, dim = x.shape
    classes, dim_w = weight.shape
    assert dim == dim_w, (dim, dim_w)

    # Inverse L2 norms, fp32, computed once (rsqrt(max(||v||^2, eps^2)) ==
    # 1/max(||v||, eps)).  Cheap fused XLA reductions outside the kernel.
    xf = x.astype(jnp.float32)
    wf = weight.astype(jnp.float32)
    inv_x = jax.lax.rsqrt(
        jnp.maximum(jnp.sum(xf * xf, axis=1, keepdims=True), _EPS * _EPS))   # (B, 1)
    inv_w = jax.lax.rsqrt(
        jnp.maximum(jnp.sum(wf * wf, axis=1, keepdims=True), _EPS * _EPS)).T  # (1, classes)

    if matmul_dtype is not None:
        # e.g. jnp.bfloat16 on v6e/v7x: MXU-native and halves HBM traffic;
        # normalization scaling above stays fp32.
        x = x.astype(matmul_dtype)
        weight = weight.astype(matmul_dtype)

    itemsize = jnp.dtype(x.dtype).itemsize
    sub = {4: 8, 2: 16, 1: 32}.get(itemsize, 8)  # native sublane packing

    # ---- batch tile -----------------------------------------------------
    if tm is None:
        tm = min(256, _round_up(B, sub))
    else:
        tm = min(tm, _round_up(B, sub))
    tm = _round_up(tm, sub)
    Bp = _round_up(B, tm)

    # ---- class tile -----------------------------------------------------
    Cp0 = _round_up(classes, 128)
    if tn is None:
        tn = min(512, Cp0)
    else:
        tn = min(tn, Cp0)
    tn = _round_up(tn, 128)
    # Keep >= 2 parallel (i, j) tiles so both TensorCores on a 2-TC chip
    # (v7x) get work when the batch fits a single i-tile.
    if Bp // tm == 1 and Cp0 // tn < 2 and Cp0 >= 256:
        tn = _round_up(Cp0 // 2, 128)
    Cp = _round_up(classes, tn)

    # ---- reduction tile: full dim unless it blows the VMEM budget --------
    Dp0 = _round_up(dim, 128)
    if tk is None:
        tk = Dp0
    else:
        tk = min(_round_up(tk, 128), Dp0)

    def _working_set(t):
        # double-buffered input tiles + double-buffered fp32 output tile
        return 2 * (tm + tn) * t * itemsize + 2 * tm * tn * 4

    while _working_set(tk) > vmem_budget_bytes and tk > 128:
        tk = max(128, _round_up(tk // 2, 128))
    Dp = _round_up(dim, tk)

    # ---- zero-pad so every block is full ---------------------------------
    if (Bp, Dp) != (B, dim):
        x = jnp.pad(x, ((0, Bp - B), (0, Dp - dim)))
    if (Cp, Dp) != (classes, dim):
        weight = jnp.pad(weight, ((0, Cp - classes), (0, Dp - dim)))
    if Bp != B:
        inv_x = jnp.pad(inv_x, ((0, Bp - B), (0, 0)))
    if Cp != classes:
        inv_w = jnp.pad(inv_w, ((0, 0), (0, Cp - classes)))

    grid = (Bp // tm, Cp // tn, Dp // tk)

    # Explicit scoped-VMEM limit: v5e's default (16 MiB) is below the working
    # set for the larger default tiles; stay well under v7x's 64 MiB physical.
    vmem_limit = int(min(max(2 * _working_set(tk) + (2 << 20), 32 << 20), 48 << 20))

    x_bytes = Bp * Dp * itemsize
    w_bytes = Cp * Dp * jnp.dtype(weight.dtype).itemsize

    out = pl.pallas_call(
        _cosine_kernel,
        out_shape=jax.ShapeDtypeStruct((Bp, Cp), jnp.float32),
        grid_spec=pltpu.PrefetchScalarGridSpec(
            num_scalar_prefetch=0,
            grid=grid,
            in_specs=[
                pl.BlockSpec((tm, tk), lambda i, j, k: (i, k)),   # x tile
                pl.BlockSpec((tn, tk), lambda i, j, k: (j, k)),   # W tile
                pl.BlockSpec((tm, 1), lambda i, j, k: (i, 0)),    # inv row norms
                pl.BlockSpec((1, tn), lambda i, j, k: (0, j)),    # inv class norms
            ],
            out_specs=pl.BlockSpec((tm, tn), lambda i, j, k: (i, j)),
        ),
        compiler_params=pltpu.CompilerParams(
            dimension_semantics=("parallel", "parallel", "arbitrary"),
            vmem_limit_bytes=vmem_limit,
        ),
        cost_estimate=pl.CostEstimate(
            flops=2 * Bp * Cp * Dp,
            transcendentals=0,  # rsqrt hoisted to the wrapper
            bytes_accessed=int(w_bytes * (Bp // tm)      # W re-read per i-tile
                               + x_bytes * (Cp // tn)    # x re-read per j-tile
                               + Bp * Cp * 4),           # output
        ),
    )(x, weight, inv_x, inv_w)

    if (Bp, Cp) != (B, classes):
        out = out[:B, :classes]
    return out


def kaiming_uniform(key, shape):
    # nn.init.kaiming_uniform_ defaults: a=0, fan_in=shape[1], gain=sqrt(2)
    # bound = gain * sqrt(3 / fan_in) = sqrt(6 / fan_in)
    fan_in = shape[1]
    bound = (6.0 / fan_in) ** 0.5
    return jax.random.uniform(key, shape, jnp.float32, minval=-bound, maxval=bound)


if __name__ == "__main__":
    key = jax.random.PRNGKey(0)
    k_x, k_w = jax.random.split(key)

    B, dim, classes = 16, 256, 256
    x = jax.random.normal(k_x, (B, dim), jnp.float32)
    weight = kaiming_uniform(k_w, (classes, dim))

    # Pure-JAX reference (matches F.normalize eps handling).
    xn = x / jnp.maximum(jnp.linalg.norm(x, axis=1, keepdims=True), _EPS)
    wn = weight / jnp.maximum(jnp.linalg.norm(weight, axis=1, keepdims=True), _EPS)
    ref = xn @ wn.T

    # Default tiles: tk = full dim (no reduction loop), 2 parallel class tiles.
    out = cosine_classifier(x, weight)
    jax.block_until_ready(out)
    assert out.shape == (B, classes)
    assert jnp.allclose(out, ref, atol=1e-4, rtol=1e-4), float(
        jnp.max(jnp.abs(out - ref)))

    # Small tiles: exercise the real (2, 2, 2) grid, including the k-axis
    # accumulate-into-output init/finalize path.
    out2 = cosine_classifier(x, weight, tm=8, tn=128, tk=128)
    jax.block_until_ready(out2)
    assert jnp.allclose(out2, ref, atol=1e-4, rtol=1e-4), float(
        jnp.max(jnp.abs(out2 - ref)))

    print("KERNEL_OK")
</pallas_src>

<mosaic_0001>
module attributes {stable_mosaic.version = 11 : i64} {
  func.func @_cosine_kernel(%arg0: i32, %arg1: i32, %arg2: i32, %arg3: memref<16x256xf32, #tpu.memory_space<vmem>>, %arg4: memref<128x256xf32, #tpu.memory_space<vmem>>, %arg5: memref<16x1xf32, #tpu.memory_space<vmem>>, %arg6: memref<1x128xf32, #tpu.memory_space<vmem>>, %arg7: memref<16x128xf32, #tpu.memory_space<vmem>>) attributes {dimension_semantics = [#tpu.dimension_semantics<parallel>, #tpu.dimension_semantics<parallel>, #tpu.dimension_semantics<arbitrary>], iteration_bounds = array<i64: 1, 2, 1>, scalar_prefetch = 0 : i64, scratch_operands = 0 : i64, tpu.core_type = #tpu.core_type<tc>, window_params = [{transform_indices = @transform_0, window_bounds = array<i64: 16, 256>}, {transform_indices = @transform_1, window_bounds = array<i64: 128, 256>}, {transform_indices = @transform_2, window_bounds = array<i64: 16, 1>}, {transform_indices = @transform_3, window_bounds = array<i64: 1, 128>}, {transform_indices = @transform_4, window_bounds = array<i64: 16, 128>}]} {
    %c0 = arith.constant 0 : index
    %c0_0 = arith.constant 0 : index
    %0 = vector.load %arg3[%c0, %c0_0] : memref<16x256xf32, #tpu.memory_space<vmem>>, vector<16x256xf32>
    %c0_1 = arith.constant 0 : index
    %c0_2 = arith.constant 0 : index
    %1 = vector.load %arg4[%c0_1, %c0_2] : memref<128x256xf32, #tpu.memory_space<vmem>>, vector<128x256xf32>
    %cst = arith.constant dense<0.000000e+00> : vector<16x128xf32>
    %2 = tpu.matmul %0, %1, %cst {dimension_numbers = #tpu.dot_dimension_numbers<[1], [1], [0], [0], [0, 0, 1, 0], [], []>} : vector<16x256xf32>, vector<128x256xf32>, vector<16x128xf32> -> vector<16x128xf32>
    %c0_i32 = arith.constant 0 : i32
    %3 = arith.cmpi eq, %arg2, %c0_i32 : i32
    %4 = arith.extui %3 : i1 to i32
    %c0_i32_3 = arith.constant 0 : i32
    %5 = arith.cmpi ne, %4, %c0_i32_3 : i32
    scf.if %5 {
      %c0_8 = arith.constant 0 : index
      %c0_9 = arith.constant 0 : index
      %12 = vector.load %arg7[%c0_8, %c0_9] : memref<16x128xf32, #tpu.memory_space<vmem>>, vector<16x128xf32>
      tpu.vector_store %arg7[%c0_8, %c0_9], %2 {strides = array<i32>} : memref<16x128xf32, #tpu.memory_space<vmem>>, vector<16x128xf32>,
    } else {
    }
    %c0_i32_4 = arith.constant 0 : i32
    %6 = arith.cmpi sgt, %arg2, %c0_i32_4 : i32
    %7 = arith.extui %6 : i1 to i32
    %c0_i32_5 = arith.constant 0 : i32
    %8 = arith.cmpi ne, %7, %c0_i32_5 : i32
    scf.if %8 {
      %c0_8 = arith.constant 0 : index
      %c0_9 = arith.constant 0 : index
      %12 = vector.load %arg7[%c0_8, %c0_9] : memref<16x128xf32, #tpu.memory_space<vmem>>, vector<16x128xf32>
      %13 = arith.addf %12, %2 : vector<16x128xf32>
      %c0_10 = arith.constant 0 : index
      %c0_11 = arith.constant 0 : index
      %14 = vector.load %arg7[%c0_10, %c0_11] : memref<16x128xf32, #tpu.memory_space<vmem>>, vector<16x128xf32>
      tpu.vector_store %arg7[%c0_10, %c0_11], %13 {strides = array<i32>} : memref<16x128xf32, #tpu.memory_space<vmem>>, vector<16x128xf32>,
    } else {
    }
    %c0_i32_6 = arith.constant 0 : i32
    %9 = arith.cmpi eq, %arg2, %c0_i32_6 : i32
    %10 = arith.extui %9 : i1 to i32
    %c0_i32_7 = arith.constant 0 : i32
    %11 = arith.cmpi ne, %10, %c0_i32_7 : i32
    scf.if %11 {
      %c0_8 = arith.constant 0 : index
      %c0_9 = arith.constant 0 : index
      %12 = vector.load %arg7[%c0_8, %c0_9] : memref<16x128xf32, #tpu.memory_space<vmem>>, vector<16x128xf32>
      %c0_10 = arith.constant 0 : index
      %c0_11 = arith.constant 0 : index
      %13 = vector.load %arg5[%c0_10, %c0_11] : memref<16x1xf32, #tpu.memory_space<vmem>>, vector<16x1xf32>
      %c0_12 = arith.constant 0 : index
      %c0_13 = arith.constant 0 : index
      %14 = vector.load %arg6[%c0_12, %c0_13] : memref<1x128xf32, #tpu.memory_space<vmem>>, vector<1x128xf32>
      %15 = vector.broadcast %13 : vector<16x1xf32> to vector<16x128xf32>
      %16 = vector.broadcast %14 : vector<1x128xf32> to vector<16x128xf32>
      %17 = arith.mulf %15, %16 : vector<16x128xf32>
      %18 = arith.mulf %12, %17 : vector<16x128xf32>
      %c0_14 = arith.constant 0 : index
      %c0_15 = arith.constant 0 : index
      %19 = vector.load %arg7[%c0_14, %c0_15] : memref<16x128xf32, #tpu.memory_space<vmem>>, vector<16x128xf32>
      tpu.vector_store %arg7[%c0_14, %c0_15], %18 {strides = array<i32>} : memref<16x128xf32, #tpu.memory_space<vmem>>, vector<16x128xf32>,
    } else {
    }
    return
  }
  func.func @transform_0(%arg0: i32, %arg1: i32, %arg2: i32) -> (i32, i32) {
    %c0_i32 = arith.constant 0 : i32
    return %arg0, %arg2 : i32, i32
  }
  func.func @transform_1(%arg0: i32, %arg1: i32, %arg2: i32) -> (i32, i32) {
    %c0_i32 = arith.constant 0 : i32
    return %arg1, %arg2 : i32, i32
  }
  func.func @transform_2(%arg0: i32, %arg1: i32, %arg2: i32) -> (i32, i32) {
    %c0_i32 = arith.constant 0 : i32
    %c0_i32_0 = arith.constant 0 : i32
    return %arg0, %c0_i32 : i32, i32
  }
  func.func @transform_3(%arg0: i32, %arg1: i32, %arg2: i32) -> (i32, i32) {
    %c0_i32 = arith.constant 0 : i32
    %c0_i32_0 = arith.constant 0 : i32
    return %c0_i32, %arg1 : i32, i32
  }
  func.func @transform_4(%arg0: i32, %arg1: i32, %arg2: i32) -> (i32, i32) {
    %c0_i32 = arith.constant 0 : i32
    return %arg0, %arg1 : i32, i32
  }
}

</mosaic_0001>

<bundles_post_ra>
// kernel: tpu_custom_call.1
= control target key start
LH: loop header
LB: loop body
LE: loop exit
PB: predicated region body
PF: predicated region fallthrough
CT: control target
= control target key end

     0   :  { %s1110_s0 = inlined_call_operand.hbm [shape: f32[16,256], index: 0, kind: input, shape index: {}]   ;;  %s1111_s1 = inlined_call_operand.hbm [shape: f32[256,256], index: 1, kind: input, shape index: {}]   ;;  %s1112_s2 = inlined_call_operand.vmem [shape: f32[16,1], index: 2, kind: input, shape index: {}]   ;;  %s1113_s3 = inlined_call_operand.vmem [shape: f32[1,256], index: 3, kind: input, shape index: {}]   ;;  %s1114_s4 = inlined_call_operand.hbm [shape: f32[16,256], index: 4, kind: output, shape index: {}]  }
   0x1   :  { %1118 = sst [smem:[#allocation12_spill]] %s1110_s0 }
   0x2   :  { %9 = vsyncpa [#allocation3], 0 }
   0x3   :  { %10 = vsyncpa [#allocation6], 0 }
   0x4   :  { %12 = vsyncpa [#allocation6 + $0x1], 0 }
   0x5   :  { %13 = vsyncpa [#allocation4], 0 }
   0x6   :  { %15 = vsyncpa [#allocation4 + $0x1], 0  ;;  %s901_s15 = smov 0   ;;  %s903_s16 = smov 0  }
   0x7   :  { %s905_s17 = smov 0   ;;  %s907_s18 = smov 0  }
   0x8   :  { %s909_s19 = smov 0   ;;  %s911_s20 = smov 0  }
   0x9 LB: > { %s588_s21 = sadd.s32 4294967295, %s867_s20   ;;  %s589_s22 = sadd.s32 4294967294, %s867_s20   ;;  %s867_s20 = sphi %s911_s20, %s21_s20   ;;  %s863_s19 = sphi %s909_s19, %s1135_s19   ;;  %s859_s18 = sphi %s907_s18, %s1134_s18   ;;  %s855_s17 = sphi %s905_s17, %s1133_s17   ;;  %s851_s16 = sphi %s903_s16, %s1132_s16   ;;  %s847_s15 = sphi %s901_s15, %s1131_s15  }
   0xa   : > { %p90_p0 = scmp.ne.s32.totalorder %s851_s16, %s847_s15  ;;  %p935_p1 = scmp.eq.s32.totalorder %s588_s21, 0 }
   0xb   : > { %p939_p2 = scmp.eq.s32.totalorder %s588_s21, 1  ;;  %p174_p3 = scmp.eq.s32.totalorder %s589_s22, 1 }
   0xc   : > { %p945_p4 = por %p935_p1, %p90_p0  ;;  %p590_p5 = scmp.ge.s32.totalorder %s867_s20, 1 }
   0xd   : > { %p950_p6 = por %p174_p3, %p90_p0  ;;  %p181_p7 = scmp.lt.s32.totalorder %s867_s20, 3 }
   0xe   : > { %s1123_s0 = sld [smem:[#allocation12_spill]]  ;;  %s869_s5 = smov [#allocation2]  }
   0xf   : > { %p958_p8 = pnand %p590_p5, %p181_p7  ;;  %s200_s6 = sshll.u32 %s869_s5, 4  ;;  %s201_s6 = int_to_ptr.vmem [resolvable:$true] %s200_s6 }
  0x10   : > { %p593_p11 = scmp.ge.s32.totalorder %s867_s20, 2  ;;  %s1115_s7 = smov 256  }
  0x11   : > { %p648_p9 = pneg %p958_p8  ;;  %s1116_s8 = smov 16  }
  0x12   : > { %s36_s9 = sadd.s32 1, %s863_s19  ;;  %s77_s10 = sadd.s32 1, %s855_s17 }
  0x13   : > { %p649_p10 = pnand %p648_p9, %p935_p1  ;;  %p38_p12 = scmp.ge.s32.totalorder %s36_s9, 2 }
  0x14   : > { %s198_s29 = sshll.u32 %s1123_s0, 4  ;;  %p84_p13 = scmp.ne.s32.totalorder %s855_s17, %s851_s16  ;;  %s199_s29 = int_to_ptr.hbm [resolvable:$true] %s198_s29 }
  0x15   : > { %651 = dma.hbm_to_vmem [thread:$0]  (!%p649_p10), %s199_s29, 512, %s201_s6, [#allocation3], %s1115_s7, %s1115_s7, %s1116_s8  }
  0x16   : > { %p85_p0 = scmp.eq.s32.totalorder %s867_s20, 0  ;;  %s1137_s9 = smov (%p38_p12, %s36_s9), 0 }
  0x17   : > { %1125 = sst [smem:[#allocation11_spill]] %s1137_s9  ;;  %p983_p5 = por %p939_p2, %p84_p13 }
  0x18   : > { %p977_p3 = por %p85_p0, %p84_p13  ;;  %s72_s13 = ssub.s32 %s863_s19, %s1137_s9 }
  0x19   : > { %p661_p7 = scmp.lt.s32.totalorder %s867_s20, 2  ;;  %p75_p9 = scmp.eq.s32.totalorder %s72_s13, 0 }
  0x1a   : > { %s223_s14 = sand.u32 1, %s855_s17   ;;  %s607_s27 = sshll.u32 %s863_s19, 8 }
  0x1b   : > { %s594_s21 = sshll.u32 %s223_s14, 8  ;;  %s235_s5 = scalar_lea.hbm %s1111_s1, %s607_s27 }
  0x1c   : > { %s992_s22 = scalar_select %p75_p9, %s855_s17, %s77_s10  }
  0x1d   : > { %s227_s6 = scalar_lea.vmem [#allocation5], %s594_s21  ;;  %s236_s24 = sshll.u32 %s235_s5, 4  ;;  %s237_s24 = int_to_ptr.hbm [resolvable:$true] %s236_s24 }
  0x1e   : > { %s238_s7 = sshll.u32 %s227_s6, 4  ;;  %p653_p2 = pnand %p661_p7, %p977_p3  ;;  %s239_s7 = int_to_ptr.vmem [resolvable:$true] %s238_s7 }
  0x1f   : > { %s224_s8 = scalar_lea.sflag [#allocation6], %s223_s14  ;;  %s1128_s0 = smov 16  }
  0x20   : > { %s1129_s9 = smov 256   ;;  %256 = sbr.rel (%p958_p8) target bundleno = 248 (0xf8), region = 36 }
  0x21   : > { %655 = dma.hbm_to_vmem [thread:$0]  (!%p653_p2), %s237_s24, 4096, %s239_s7, %s224_s8, %s1129_s9, %s1129_s9, %s1128_s0  }
  0x25   : > { %834 = dma.done.wait (%p935_p1), [#allocation3], 512  }
  0x26   : > { %836 = vsyncadd (%p935_p1), [#allocation3], 4294966784  ;;  %s1010_s10 = sand.u32 1, %s851_s16  }
  0x27   : > { %s600_s11 = sshll.u32 %s1010_s10, 8  ;;  %s264_s13 = scalar_lea.sflag [#allocation6], %s1010_s10 }
  0x28   : > { %s1014_s14 = scalar_lea.vmem [#allocation5], %s600_s11 }
  0x29   : > { %838 = dma.done.wait (%p945_p4), %s264_s13, 4096  }
  0x2a   : > { %840 = vsyncadd (%p945_p4), %s264_s13, 4294963200  ;;  %p311_p1 = scmp.lt.s32.totalorder %s859_s18, 1  ;;  %v349_v0 = vld [vmem:[%s1014_s14 + $0xf0] sm:$0xff]  ;;  %v350_v1 = vld [vmem:[%s1014_s14 + $0xf8] sm:$0xff]  ;;  %v872_v21 = vmov 0   ;;  %s601_s29 = sshll.u32 %s1010_s10, 4 }
  0x2b   : > { %351 = vmatpush.xpose.msra.mxu0 %v349_v0  ;;  %608 = vmatpush.xpose.msra.mxu2 %v349_v0  ;;  %v347_v2 = vld [vmem:[%s1014_s14 + $0xe0] sm:$0xff]  ;;  %v348_v3 = vld [vmem:[%s1014_s14 + $0xe8] sm:$0xff]  ;;  %v345_v4 = vld [vmem:[%s1014_s14 + $0xd0] sm:$0xff]  ;;  %s603_s5 = sshll.u32 %s859_s18, 3  ;;  %s300_s13 = scalar_lea.vmem [#allocation7], %s601_s29 }
  0x2c   : > { %374 = vmatpush.xpose.msra.mxu1 %v350_v1  ;;  %624 = vmatpush.xpose.msra.mxu3 %v350_v1  ;;  %s1025_s0 = scalar_select %p311_p1, %s859_s18, 1  ;;  %v346_v5 = vld [vmem:[%s1014_s14 + $0xd8] sm:$0xff]  ;;  %v343_v6 = vld [vmem:[%s1014_s14 + $0xc0] sm:$0xff]  ;;  %v344_v7 = vld [vmem:[%s1014_s14 + $0xc8] sm:$0xff] }
  0x2d   : > { %v341_v8 = vld [vmem:[%s1014_s14 + $0xb0] sm:$0xff]  ;;  %v342_v9 = vld [vmem:[%s1014_s14 + $0xb8] sm:$0xff]  ;;  %v339_v10 = vld [vmem:[%s1014_s14 + $0xa0] sm:$0xff]  ;;  %719 = vset.pattern.permute.xlu0 %v872_v21  ;;  %s454_s11 = scalar_lea.hbm %s1114_s4, %s603_s5  ;;  %s441_s18 = scalar_lea.sflag [#allocation4], %s1010_s10 }
  0x2e   : > { %s313_s30 = scalar_lea.vmem %s1113_s3, %s1025_s0  ;;  %v340_v11 = vld [vmem:[%s1014_s14 + $0xa8] sm:$0xff]  ;;  %v337_v12 = vld [vmem:[%s1014_s14 + $0x90] sm:$0xff]  ;;  %v338_v13 = vld [vmem:[%s1014_s14 + $0x98] sm:$0xff]  ;;  %s457_s0 = sshll.u32 %s454_s11, 4  ;;  %s458_s0 = int_to_ptr.hbm [resolvable:$true] %s457_s0 }
  0x2f   : > { %352 = vmatpush.xpose.msra.mxu0 %v347_v2  ;;  %609 = vmatpush.xpose.msra.mxu2 %v347_v2  ;;  %v335_v14 = vld [vmem:[%s1014_s14 + $0x80] sm:$0xff]  ;;  %v336_v15 = vld [vmem:[%s1014_s14 + $0x88] sm:$0xff]  ;;  %v333_v16 = vld [vmem:[%s1014_s14 + $0x70] sm:$0xff]  ;;  %s795_s23 = sshra.s32 %s458_s0, 4  ;;  %s801_s8 = scalar_lea.hbm %s1114_s4, 32  ;;  %s796_s23 = int_to_ptr.hbm [resolvable:$true] %s795_s23 }
  0x30   : > { %375 = vmatpush.xpose.msra.mxu1 %v348_v3  ;;  %625 = vmatpush.xpose.msra.mxu3 %v348_v3  ;;  %v334_v17 = vld [vmem:[%s1014_s14 + $0x78] sm:$0xff]  ;;  %v418_v18 = vld [vmem:[%s1112_s2] sm:$0xff]  ;;  %v332_v20 = vld [vmem:[%s1014_s14 + $0x68] sm:$0xff]  ;;  %s797_s25 = scalar_lea.hbm %s796_s23, 16  ;;  %p802_p12 = scmp.lt.s32.totalorder %s796_s23, %s1114_s4 }
  0x31   : > { %v331_v19 = vld [vmem:[%s1014_s14 + $0x60] sm:$0xff]  ;;  %423 = vperm.xlu0 %719, %v418_v18   ;;  %v329_v22 = vld [vmem:[%s1014_s14 + $0x50] sm:$0xff]  ;;  %v330_v23 = vld [vmem:[%s1014_s14 + $0x58] sm:$0xff]  ;;  %p798_p4 = scmp.ne.s32.totalorder %s796_s23, %s797_s25  ;;  %p803_p13 = scmp.lt.s32.totalorder %s801_s8, %s797_s25 }
  0x32   : > { %v419_v24 = vld [vmem:[%s1112_s2 + $0x8] sm:$0xff]  ;;  %v327_v25 = vld [vmem:[%s1014_s14 + $0x40] sm:$0xff]  ;;  %v325_v27 = vld [vmem:[%s1014_s14 + $0x30] sm:$0xff] }
  0x33   : > { %353 = vmatpush.xpose.msra.mxu0 %v345_v4  ;;  %610 = vmatpush.xpose.msra.mxu2 %v345_v4  ;;  %v328_v26 = vld [vmem:[%s1014_s14 + $0x48] sm:$0xff]  ;;  %v326_v28 = vld [vmem:[%s1014_s14 + $0x38] sm:$0xff]  ;;  %v323_v29 = vld [vmem:[%s1014_s14 + $0x20] sm:$0xff]  ;;  %p799_p8 = pnand %p798_p4, %p983_p5  ;;  %p804_p0 = por %p803_p13, %p802_p12 }
  0x34   : > { %376 = vmatpush.xpose.msra.mxu1 %v346_v5  ;;  %626 = vmatpush.xpose.msra.mxu3 %v346_v5  ;;  %v324_v30 = vld [vmem:[%s1014_s14 + $0x28] sm:$0xff]  ;;  %v321_v31 = vld [vmem:[%s1014_s14 + $0x10] sm:$0xff]  ;;  %v322_v32 = vld [vmem:[%s1014_s14 + $0x18] sm:$0xff] }
  0x35   : > { %v319_v33 = vld [vmem:[%s1014_s14] sm:$0xff]  ;;  %v320_v34 = vld [vmem:[%s1014_s14 + $0x8] sm:$0xff]  ;;  %v317_v36 = vld [vmem:[#allocation2 + $0x10] sm:$0xff]  ;;  %s455_s14 = sshll.u32 %s300_s13, 4  ;;  %p800_p10 = pneg %p799_p8  ;;  %s456_s14 = int_to_ptr.vmem [resolvable:$true] %s455_s14 }
  0x36   : > { %v315_v35 = vld [vmem:[#allocation2] sm:$0xff]  ;;  %v316_v37 = vld [vmem:[#allocation2 + $0x8] sm:$0xff]  ;;  %v318_v38 = vld [vmem:[#allocation2 + $0x18] sm:$0xff] }
  0x37   : > { %354 = vmatpush.xpose.msra.mxu0 %v343_v6  ;;  %611 = vmatpush.xpose.msra.mxu2 %v343_v6  ;;  %v720_v40 = vld [vmem:[%s313_s30] ss:$0 sm:$0xff]  ;;  %p805_p3 = pnand %p804_p0, %p800_p10 }
  0x38   : > { %377 = vmatpush.xpose.msra.mxu1 %v344_v7  ;;  %627 = vmatpush.xpose.msra.mxu3 %v344_v7 }
  0x39   : > { %428 = vperm.xlu0 %719, %v419_v24  }
  0x3b   : > { %355 = vmatpush.xpose.msra.mxu0 %v341_v8  ;;  %612 = vmatpush.xpose.msra.mxu2 %v341_v8 }
  0x3c   : > { %378 = vmatpush.xpose.msra.mxu1 %v342_v9  ;;  %628 = vmatpush.xpose.msra.mxu3 %v342_v9 }
  0x3f   : > { %356 = vmatpush.xpose.msra.mxu0 %v339_v10  ;;  %613 = vmatpush.xpose.msra.mxu2 %v339_v10 }
  0x40   : > { %379 = vmatpush.xpose.msra.mxu1 %v340_v11  ;;  %629 = vmatpush.xpose.msra.mxu3 %v340_v11 }
  0x43   : > { %357 = vmatpush.xpose.msra.mxu0 %v337_v12  ;;  %614 = vmatpush.xpose.msra.mxu2 %v337_v12 }
  0x44   : > { %380 = vmatpush.xpose.msra.mxu1 %v338_v13  ;;  %630 = vmatpush.xpose.msra.mxu3 %v338_v13 }
  0x47   : > { %358 = vmatpush.xpose.msra.mxu0 %v335_v14  ;;  %615 = vmatpush.xpose.msra.mxu2 %v335_v14 }
  0x48   : > { %381 = vmatpush.xpose.msra.mxu1 %v336_v15  ;;  %631 = vmatpush.xpose.msra.mxu3 %v336_v15 }
  0x4b   : > { %359 = vmatpush.xpose.msra.mxu0 %v333_v16  ;;  %616 = vmatpush.xpose.msra.mxu2 %v333_v16 }
  0x4c   : > { %382 = vmatpush.xpose.msra.mxu1 %v334_v17  ;;  %632 = vmatpush.xpose.msra.mxu3 %v334_v17 }
  0x4f   : > { %360 = vmatpush.xpose.msra.mxu0 %v331_v19  ;;  %617 = vmatpush.xpose.msra.mxu2 %v331_v19 }
  0x50   : > { %383 = vmatpush.xpose.msra.mxu1 %v332_v20  ;;  %633 = vmatpush.xpose.msra.mxu3 %v332_v20 }
  0x53   : > { %361 = vmatpush.xpose.msra.mxu0 %v329_v22  ;;  %618 = vmatpush.xpose.msra.mxu2 %v329_v22 }
  0x54   : > { %384 = vmatpush.xpose.msra.mxu1 %v330_v23  ;;  %634 = vmatpush.xpose.msra.mxu3 %v330_v23 }
  0x57   : > { %362 = vmatpush.xpose.msra.mxu0 %v327_v25  ;;  %619 = vmatpush.xpose.msra.mxu2 %v327_v25 }
  0x58   : > { %385 = vmatpush.xpose.msra.mxu1 %v328_v26  ;;  %635 = vmatpush.xpose.msra.mxu3 %v328_v26 }
  0x5b   : > { %363 = vmatpush.xpose.msra.mxu0 %v325_v27  ;;  %620 = vmatpush.xpose.msra.mxu2 %v325_v27 }
  0x5c   : > { %386 = vmatpush.xpose.msra.mxu1 %v326_v28  ;;  %636 = vmatpush.xpose.msra.mxu3 %v326_v28 }
  0x5f   : > { %364 = vmatpush.xpose.msra.mxu0 %v323_v29  ;;  %621 = vmatpush.xpose.msra.mxu2 %v323_v29 }
  0x60   : > { %387 = vmatpush.xpose.msra.mxu1 %v324_v30  ;;  %637 = vmatpush.xpose.msra.mxu3 %v324_v30 }
  0x63   : > { %365 = vmatpush.xpose.msra.mxu0 %v321_v31  ;;  %622 = vmatpush.xpose.msra.mxu2 %v321_v31 }
  0x64   : > { %388 = vmatpush.xpose.msra.mxu1 %v322_v32  ;;  %638 = vmatpush.xpose.msra.mxu3 %v322_v32 }
  0x67   : > { %366 = vmatpush.xpose.msra.mxu0 %v319_v33  ;;  %623 = vmatpush.xpose.msra.mxu2 %v319_v33 }
  0x68   : > { %389 = vmatpush.xpose.msra.mxu1 %v320_v34  ;;  %639 = vmatpush.xpose.msra.mxu3 %v320_v34 }
  0x6a   : > { %367 = vmatmul.f32.vlgmr.msra.gmra.mxu0 %v315_v35  ;;  %370 = vmatmul.f32.vlgmr.msra.gmra.mxu2 %v317_v36 }
  0x6b   : > { %390 = vmatmul.f32.vlgmr.msra.gmra.mxu1 %v316_v37  ;;  %393 = vmatmul.f32.vlgmr.msra.gmra.mxu3 %v318_v38 }
  0xa3   : > { %v424_v39 = vpop.permute.xlu0 %423 }
  0xa4   : > { %v434_v43 = vmul.f32 %v720_v40, %v424_v39 }
  0xab   : > { %v429_v46 = vpop.permute.xlu0 %428 }
  0xac   : > { %v435_v49 = vmul.f32 %v720_v40, %v429_v46 }
  0xe7   : > { %v368_v41 = vpop.f32.mrf.mxu0 }
  0xe8   : > { %v391_v42 = vpop.f32.mrf.mxu1 }
  0xe9   : > { %v392_v44 = vadd.f32 %v391_v42, %v368_v41 }
  0xeb   : > { %v436_v45 = vmul.f32 %v434_v43, %v392_v44 }
  0xed   : > { %438 = vst [vmem:[%s300_s13] sm:$0xff] %v436_v45  ;;  %v371_v47 = vpop.f32.mrf.mxu2 }
  0xee   : > { %v394_v48 = vpop.f32.mrf.mxu3 }
  0xef   : > { %v395_v50 = vadd.f32 %v394_v48, %v371_v47 }
  0xf1   : > { %v437_v51 = vmul.f32 %v435_v49, %v395_v50 }
  0xf3   : > { %439 = vst [vmem:[%s300_s13 + $0x8] sm:$0xff] %v437_v51 }
  0xf4   : > { %808 = shalt.err (!%p805_p3)
}
  0xf5   : > { %s873_s10 = smov 128   ;;  %s874_s27 = smov 256  }
  0xf6   : > { %s875_s28 = smov 8  }
  0xf7   : > { %646 = dma.vmem_to_hbm [thread:$0]  (%p983_p5), %s456_s14, 256, %s458_s0, %s441_s18, %s873_s10, %s874_s27, %s875_s28  }
  0xf8 PF: > { %s472_s29 = sand.u32 1, %s847_s15   ;;  %p657_p7 = pnand %p593_p11, %p950_p6 }
  0xf9   : > { %s473_s5 = scalar_lea.sflag [#allocation4], %s472_s29 }
  0xfa   : > { %p658_p9 = pneg %p657_p7 }
  0xfc   : > { %842 = dma.done.wait (%p658_p9), %s473_s5, 256  }
  0xfd   : > { %844 = vsyncadd (%p658_p9), %s473_s5, 4294967040  ;;  %s21_s20 = sadd.s32 1, %s867_s20   ;;  %s1130_s12 = sld [smem:[#allocation11_spill]] }
  0xfe   : > { %p18_p2 = scmp.ge.s32.totalorder %s21_s20, 4   ;;  %s1131_s15 = smov %s851_s16 }
  0xff   : > { %s1132_s16 = smov %s855_s17  ;;  %s1133_s17 = smov %s992_s22 }
 0x100   : > { %s1134_s18 = smov %s863_s19  ;;  %20 = sbr.rel (!%p18_p2) target bundleno = 9 (0x9), region = 105 }
 0x103   : > { %s1135_s19 = smov %s1130_s12 }
 0x105   :  { %479 = vsyncpa [#allocation3], 1 }
 0x106   :  { %481 = vsyncpa [#allocation3 + $0x1], 1 }
 0x107   :  { %482 = vsyncpa [#allocation6], 1 }
 0x108   :  { %484 = vsyncpa [#allocation6 + $0x1], 1 }
 0x109   :  { %485 = vsyncpa [#allocation4], 1 }
 0x10a   :  { %487 = vsyncpa [#allocation4 + $0x1], 1 }

</bundles_post_ra>
